<compile_context>
chip_gen: v5e
topology: v5e:2x2
jax: 0.10.0
libtpu: 0.0.40
codegen_flags: <defaults>
</compile_context>

<pallas_src>
import jax
import jax.numpy as jnp
import numpy as np
from jax.experimental import pallas as pl
from jax.experimental.pallas import tpu as pltpu


def _joints_mse_kernel(pred_ref, gt_ref, w2_ref, out_ref):
    """pred/gt: (tm, HW) native dtype; w2: (tm, 1) f32; out: (8, 1) f32 partial."""
    d = pred_ref[...].astype(jnp.float32) - gt_ref[...].astype(jnp.float32)
    sq = d * d * w2_ref[...]                     # (tm, HW), w2 broadcasts over lanes
    tm = sq.shape[0]                             # static, multiple of 8

    # Sublane-group fold (tm, HW) -> (8, HW): tile-aligned static slices, pure VPU adds.
    acc = sq[0:8, :]
    for r in range(1, tm // 8):
        acc = acc + sq[r * 8:(r + 1) * 8, :]

    # Single small cross-lane reduce per block (8 x HW elements -> (8, 1)).
    out_ref[...] = jnp.sum(acc, axis=1, keepdims=True)


def _round_up(x, m):
    return (x + m - 1) // m * m


def _choose_block_rows(rows8, tm_cap):
    """Largest multiple of 8 <= tm_cap that divides rows8 (rows8 % 8 == 0)."""
    if rows8 <= tm_cap:
        return rows8
    best = 8
    for t in range(tm_cap, 7, -8):
        if rows8 % t == 0:
            best = t
            break
    if best < min(64, tm_cap):
        # No reasonable divisor: pad rows up to a multiple of tm_cap instead.
        best = tm_cap
    return best


def joints_mse_loss(output, target, target_weight=None, *, use_target_weight=True,
                    max_block_rows=None):
    """output, target: (B, J, H, W); target_weight: (B, J, 1). Returns f32 scalar."""
    B, J, H, W = output.shape
    HW = H * W
    rows = B * J

    pred = output.reshape(rows, HW)              # native dtype, cast happens in-kernel
    gt = target.reshape(rows, HW)
    if use_target_weight:
        if target_weight is None:
            raise ValueError("target_weight required when use_target_weight=True")
        w = target_weight.astype(jnp.float32).reshape(rows, 1)
        w2 = w * w                               # pre-squared per-(b, j) weight
    else:
        w2 = jnp.ones((rows, 1), dtype=jnp.float32)

    # --- tile sizing -------------------------------------------------------
    itemsize = jnp.dtype(output.dtype).itemsize
    # Per-row VMEM cost: 2 inputs x 2 pipeline buffers (native dtype) plus ~4
    # f32-sized elementwise temporaries inside the kernel.
    bytes_per_row = HW * (4 * itemsize + 16)
    vmem_budget = 24 * 1024 * 1024               # sized against vmem_limit_bytes=32 MiB
    tm_cap = max(8, (min(1024, vmem_budget // max(bytes_per_row, 1)) // 8) * 8)
    if max_block_rows is not None:
        tm_cap = max(8, min(tm_cap, (int(max_block_rows) // 8) * 8))

    rows8 = _round_up(rows, 8)
    tm = _choose_block_rows(rows8, tm_cap)
    rows_pad = _round_up(rows8, tm)
    num_blocks = rows_pad // tm

    if rows_pad != rows:
        pad = rows_pad - rows
        pred = jnp.pad(pred, ((0, pad), (0, 0)))
        gt = jnp.pad(gt, ((0, pad), (0, 0)))
        w2 = jnp.pad(w2, ((0, pad), (0, 0)))     # zero weight -> padded rows contribute 0

    # --- pallas call -------------------------------------------------------
    partials = pl.pallas_call(
        _joints_mse_kernel,
        out_shape=jax.ShapeDtypeStruct((num_blocks * 8, 1), jnp.float32),
        grid_spec=pltpu.PrefetchScalarGridSpec(
            num_scalar_prefetch=0,
            grid=(num_blocks,),
            in_specs=[
                pl.BlockSpec((tm, HW), lambda i: (i, 0)),
                pl.BlockSpec((tm, HW), lambda i: (i, 0)),
                pl.BlockSpec((tm, 1), lambda i: (i, 0)),
            ],
            out_specs=pl.BlockSpec((8, 1), lambda i: (i, 0)),
        ),
        compiler_params=pltpu.CompilerParams(
            dimension_semantics=("parallel",),
            vmem_limit_bytes=32 * 1024 * 1024,
        ),
    )(pred, gt, w2)

    return 0.5 * jnp.sum(partials) / jnp.float32(J)


def _reference_loss(output, target, target_weight):
    # pure-JAX reference mirroring the PyTorch forward exactly
    B, J, H, W = output.shape
    pred = output.reshape(B, J, H * W).astype(jnp.float32)
    gt = target.reshape(B, J, H * W).astype(jnp.float32)
    w = target_weight.astype(jnp.float32)        # (B, J, 1)
    loss = 0.0
    for idx in range(J):
        d = pred[:, idx] * w[:, idx] - gt[:, idx] * w[:, idx]
        loss = loss + 0.5 * jnp.sum(d * d)
    return loss / J


if __name__ == "__main__":
    key = jax.random.PRNGKey(0)
    k1, k2, k3 = jax.random.split(key, 3)

    # Case 1: small f32 heatmaps (single block).
    B, J, H, W = 2, 4, 16, 16
    output = jax.random.normal(k1, (B, J, H, W), dtype=jnp.float32)
    target = jax.random.normal(k2, (B, J, H, W), dtype=jnp.float32)
    target_weight = jax.random.uniform(k3, (B, J, 1), dtype=jnp.float32)

    loss = jax.block_until_ready(joints_mse_loss(output, target, target_weight))
    ref = jax.block_until_ready(_reference_loss(output, target, target_weight))
    assert np.allclose(np.asarray(loss), np.asarray(ref), rtol=1e-5, atol=1e-5), (
        float(loss), float(ref))

    # Case 2: bf16 heatmaps with forced multi-block row tiling (exercises the
    # in-kernel cast, the grid pipeline and the parallel partial-sum reduce).
    B2, J2, H2, W2 = 4, 16, 16, 24
    o2 = jax.random.normal(k1, (B2, J2, H2, W2), dtype=jnp.bfloat16)
    t2 = jax.random.normal(k2, (B2, J2, H2, W2), dtype=jnp.bfloat16)
    tw2 = jax.random.uniform(k3, (B2, J2, 1), dtype=jnp.float32)

    loss2 = jax.block_until_ready(joints_mse_loss(o2, t2, tw2, max_block_rows=16))
    ref2 = jax.block_until_ready(_reference_loss(o2, t2, tw2))
    assert np.allclose(np.asarray(loss2), np.asarray(ref2), rtol=1e-4, atol=1e-4), (
        float(loss2), float(ref2))

    print("KERNEL_OK")
</pallas_src>

<mosaic_0001>
module attributes {stable_mosaic.version = 11 : i64} {
  func.func @_joints_mse_kernel(%arg0: i32, %arg1: memref<8x256xf32, #tpu.memory_space<vmem>>, %arg2: memref<8x256xf32, #tpu.memory_space<vmem>>, %arg3: memref<8x1xf32, #tpu.memory_space<vmem>>, %arg4: memref<8x1xf32, #tpu.memory_space<vmem>>) attributes {dimension_semantics = [#tpu.dimension_semantics<parallel>], iteration_bounds = array<i64: 1>, scalar_prefetch = 0 : i64, scratch_operands = 0 : i64, tpu.core_type = #tpu.core_type<tc>, window_params = [{transform_indices = @transform_0, window_bounds = array<i64: 8, 256>}, {transform_indices = @transform_1, window_bounds = array<i64: 8, 256>}, {transform_indices = @transform_2, window_bounds = array<i64: 8, 1>}, {transform_indices = @transform_3, window_bounds = array<i64: 8, 1>}]} {
    %c0 = arith.constant 0 : index
    %c0_0 = arith.constant 0 : index
    %0 = vector.load %arg1[%c0, %c0_0] : memref<8x256xf32, #tpu.memory_space<vmem>>, vector<8x256xf32>
    %c0_1 = arith.constant 0 : index
    %c0_2 = arith.constant 0 : index
    %1 = vector.load %arg2[%c0_1, %c0_2] : memref<8x256xf32, #tpu.memory_space<vmem>>, vector<8x256xf32>
    %2 = arith.subf %0, %1 : vector<8x256xf32>
    %3 = arith.mulf %2, %2 : vector<8x256xf32>
    %c0_3 = arith.constant 0 : index
    %c0_4 = arith.constant 0 : index
    %4 = vector.load %arg3[%c0_3, %c0_4] : memref<8x1xf32, #tpu.memory_space<vmem>>, vector<8x1xf32>
    %5 = vector.broadcast %4 : vector<8x1xf32> to vector<8x256xf32>
    %6 = arith.mulf %3, %5 : vector<8x256xf32>
    %cst = arith.constant dense<0.000000e+00> : vector<8xf32>
    %7 = vector.multi_reduction <add>, %6, %cst [1] : vector<8x256xf32> to vector<8xf32>
    %8 = vector.shape_cast %7 : vector<8xf32> to vector<8x1xf32>
    %c0_5 = arith.constant 0 : index
    %c0_6 = arith.constant 0 : index
    %9 = vector.load %arg4[%c0_5, %c0_6] : memref<8x1xf32, #tpu.memory_space<vmem>>, vector<8x1xf32>
    tpu.vector_store %arg4[%c0_5, %c0_6], %8 {strides = array<i32>} : memref<8x1xf32, #tpu.memory_space<vmem>>, vector<8x1xf32>,
    return
  }
  func.func @transform_0(%arg0: i32) -> (i32, i32) {
    %c0_i32 = arith.constant 0 : i32
    %c0_i32_0 = arith.constant 0 : i32
    return %arg0, %c0_i32 : i32, i32
  }
  func.func @transform_1(%arg0: i32) -> (i32, i32) {
    %c0_i32 = arith.constant 0 : i32
    %c0_i32_0 = arith.constant 0 : i32
    return %arg0, %c0_i32 : i32, i32
  }
  func.func @transform_2(%arg0: i32) -> (i32, i32) {
    %c0_i32 = arith.constant 0 : i32
    %c0_i32_0 = arith.constant 0 : i32
    return %arg0, %c0_i32 : i32, i32
  }
  func.func @transform_3(%arg0: i32) -> (i32, i32) {
    %c0_i32 = arith.constant 0 : i32
    %c0_i32_0 = arith.constant 0 : i32
    return %arg0, %c0_i32 : i32, i32
  }
}

</mosaic_0001>

<bundles_post_ra>
// kernel: tpu_custom_call.1
= control target key start
LH: loop header
LB: loop body
LE: loop exit
PB: predicated region body
PF: predicated region fallthrough
CT: control target
= control target key end

     0   :  { %8 = vsyncpa [#allocation3], 0  ;;  %s160_s0 = inlined_call_operand.hbm [shape: f32[8,256], index: 0, kind: input, shape index: {}]   ;;  %s161_s1 = inlined_call_operand.hbm [shape: f32[8,256], index: 1, kind: input, shape index: {}]   ;;  %s162_s2 = inlined_call_operand.vmem [shape: f32[8,1], index: 2, kind: input, shape index: {}]   ;;  %s163_s3 = inlined_call_operand.vmem [shape: f32[8,1], index: 3, kind: output, shape index: {}]  }
   0x1   :  { %s15_s14 = sshll.u32 %s160_s0, 4  ;;  %s16_s14 = int_to_ptr.hbm [resolvable:$true] %s15_s14 }
   0x2   :  { %9 = vsyncpa [#allocation5], 0  ;;  %s125_s15 = smov [#allocation2]   ;;  %s26_s19 = sshll.u32 %s161_s1, 4  ;;  %s27_s19 = int_to_ptr.hbm [resolvable:$true] %s26_s19 }
   0x3   :  { %s17_s16 = sshll.u32 %s125_s15, 4  ;;  %s126_s20 = smov [#allocation4]   ;;  %s18_s16 = int_to_ptr.vmem [resolvable:$true] %s17_s16 }
   0x4   :  { %20 = dma.hbm_to_vmem [thread:$0]  %s16_s14, 256, %s18_s16, [#allocation3]  }
   0x5   :  { %s28_s21 = sshll.u32 %s126_s20, 4  ;;  %s29_s21 = int_to_ptr.vmem [resolvable:$true] %s28_s21 }
   0x6   :  { %31 = dma.hbm_to_vmem [thread:$0]  %s27_s19, 256, %s29_s21, [#allocation5]  }
   0x7   :  { %121 = dma.done.wait [#allocation3], 256  }
   0x8   :  { %122 = vsyncadd [#allocation3], 4294967040 }
   0x9   :  { %123 = dma.done.wait [#allocation5], 256  }
   0xa   :  { %124 = vsyncadd [#allocation5], 4294967040  ;;  %v127_v0 = vmov 0   ;;  %v50_v1 = vld [vmem:[%s162_s2] sm:$0xff]  ;;  %v43_v3 = vld [vmem:[#allocation2 + $0x8] sm:$0xff]  ;;  %vm61_vm0 = vcmask 7168  }
   0xb   :  { %72 = vset.pattern.permute.xlu0 %v127_v0  ;;  %v42_v2 = vld [vmem:[#allocation2] sm:$0xff]  ;;  %v44_v4 = vld [vmem:[#allocation4] sm:$0xff]  ;;  %v45_v5 = vld [vmem:[#allocation4 + $0x8] sm:$0xff] }
   0xc   :  { %53 = vperm.xlu0 %72, %v50_v1   ;;  %v46_v6 = vsub.f32 %v42_v2, %v44_v4  ;;  %v47_v7 = vsub.f32 %v43_v3, %v45_v5 }
   0xe   :  { %v48_v8 = vmul.f32 %v46_v6, %v46_v6  ;;  %v49_v9 = vmul.f32 %v47_v7, %v47_v7 }
  0x7e   :  { %v54_v10 = vpop.permute.xlu0 %53 }
  0x7f   :  { %v56_v11 = vmul.f32 %v54_v10, %v48_v8  ;;  %v57_v12 = vmul.f32 %v54_v10, %v49_v9 }
  0x81   :  { %v58_v13 = vadd.f32 %v57_v12, %v56_v11 }
  0x83   :  { %59 = vadd.xlane.f32.xlu0 %v58_v13 }
  0xf6   :  { %v60_v14 = vpop.xlane.xlu0 %59 }
  0xf7   :  { %62 = vst.msk [vmem:[%s163_s3] sm:$0xff] %vm61_vm0, %v60_v14 }
  0xf8   :  { %67 = vsyncpa [#allocation3], 1 }
  0xf9   :  { %68 = vsyncpa [#allocation5], 1 }

</bundles_post_ra>
